<compile_context>
chip_gen: v7x
topology: tpu7x:2x2x1
jax: 0.10.0
libtpu: 0.0.40
codegen_flags: <defaults>
</compile_context>

<pallas_src>
import functools

import jax
import jax.numpy as jnp
from jax.experimental import pallas as pl
from jax.experimental.pallas import tpu as pltpu


def _round_up(x, m):
    return ((x + m - 1) // m) * m


# ----------------------------------------------------------- fused kernel ---
def _make_fused_kernel(n_lc):
    """Kernel for fc1 (pos-neg already fused) followed by n_lc LC layers."""

    def kernel(*refs):
        x_ref, w1_ref, b1_ref = refs[0], refs[1], refs[2]
        o_ref = refs[-1]
        # fc1: x @ (Wpos - Wneg)^T + (bpos - bneg)      -> [bn, d*m1]
        h = jnp.dot(x_ref[...], w1_ref[...],
                    preferred_element_type=jnp.float32) + b1_ref[...]
        # sigmoid + LocallyConnected layers as block-diagonal matmuls.
        for l in range(n_lc):
            w_ref = refs[3 + 2 * l]
            b_ref = refs[4 + 2 * l]
            h = jnp.dot(jax.nn.sigmoid(h), w_ref[...],
                        preferred_element_type=jnp.float32) + b_ref[...]
        o_ref[...] = h.astype(o_ref.dtype)

    return kernel


# ----------------------------------------------- wrapper-side weight packing
def _block_diag_weight(w):
    # w: [d, m_in, m_out]  ->  block-diagonal [d*m_in, d*m_out]
    d, m_in, m_out = w.shape
    eye = jnp.eye(d, dtype=w.dtype)
    bd = eye[:, None, :, None] * w[:, :, None, :]          # [d, m_in, d, m_out]
    return bd.reshape(d * m_in, d * m_out)


def notears_mlp_forward(x, params, dims, *, block_n=None):
    assert len(dims) >= 2 and dims[-1] == 1
    d, m1 = dims[0], dims[1]
    n = x.shape[0]
    n_lc = len(dims) - 2

    # Fuse fc1_pos - fc1_neg into a single weight / bias (plain XLA, cheap).
    w1 = (params["fc1_pos_w"] - params["fc1_neg_w"]).T.astype(jnp.float32)   # [d, d*m1]
    b1 = (params["fc1_pos_b"] - params["fc1_neg_b"]).reshape(1, d * m1).astype(jnp.float32)

    lc_args, lc_specs = [], []
    for (w, b) in params["fc2"]:
        m_in, m_out = w.shape[1], w.shape[2]
        lc_args.append(_block_diag_weight(w.astype(jnp.float32)))            # [d*m_in, d*m_out]
        lc_args.append(b.astype(jnp.float32).reshape(1, d * m_out))
        lc_specs.append(pl.BlockSpec((d * m_in, d * m_out), lambda i: (0, 0)))
        lc_specs.append(pl.BlockSpec((1, d * m_out), lambda i: (0, 0)))

    d_out = d * dims[-1]          # == d (dims[-1] == 1)

    # Batch tiling: large lane-dense tiles; pad ragged batches.
    if block_n is None:
        block_n = min(1024, _round_up(n, 8))
    n_pad = _round_up(n, block_n)
    x_p = x.astype(jnp.float32)
    if n_pad != n:
        x_p = jnp.pad(x_p, ((0, n_pad - n), (0, 0)))

    out = pl.pallas_call(
        _make_fused_kernel(n_lc),
        out_shape=jax.ShapeDtypeStruct((n_pad, d_out), x.dtype),
        grid=(n_pad // block_n,),
        in_specs=[
            pl.BlockSpec((block_n, d), lambda i: (i, 0)),     # x tile
            pl.BlockSpec((d, d * m1), lambda i: (0, 0)),      # fused fc1 weight
            pl.BlockSpec((1, d * m1), lambda i: (0, 0)),      # fused fc1 bias
        ] + lc_specs,
        out_specs=pl.BlockSpec((block_n, d_out), lambda i: (i, 0)),
        compiler_params=pltpu.CompilerParams(
            dimension_semantics=("parallel",)),
    )(x_p, w1, b1, *lc_args)
    return out[:n]


# ------------------------------------------------------- deterministic params
def init_params(key, dims):
    d, m1 = dims[0], dims[1]
    n_lc = len(dims) - 2
    keys = jax.random.split(key, 4 + 2 * max(n_lc, 1))
    bnd = 1.0 / jnp.sqrt(jnp.float32(d))
    # nn.Linear(d, d*m1): weight [d*m1, d], bias [d*m1]  (PyTorch layout).
    wpos = jax.random.uniform(keys[0], (d * m1, d), jnp.float32, -bnd, bnd)
    wneg = jax.random.uniform(keys[1], (d * m1, d), jnp.float32, -bnd, bnd)
    bpos = jax.random.uniform(keys[2], (d * m1,), jnp.float32, -bnd, bnd)
    bneg = jax.random.uniform(keys[3], (d * m1,), jnp.float32, -bnd, bnd)
    params = {
        "fc1_pos_w": wpos, "fc1_neg_w": wneg,
        "fc1_pos_b": bpos, "fc1_neg_b": bneg,
        "fc2": [],
    }
    for l in range(n_lc):
        m_in, m_out = dims[l + 1], dims[l + 2]
        k = 1.0 / jnp.sqrt(jnp.float32(m_in))
        w = jax.random.uniform(keys[4 + 2 * l], (d, m_in, m_out), jnp.float32, -k, k)
        b = jax.random.uniform(keys[5 + 2 * l], (d, m_out), jnp.float32, -k, k)
        params["fc2"].append((w, b))
    return params


# --------------------------------------------------------- pure-JAX reference
def reference_forward(x, params, dims):
    h = (x @ params["fc1_pos_w"].T + params["fc1_pos_b"]) \
        - (x @ params["fc1_neg_w"].T + params["fc1_neg_b"])
    h = h.reshape(-1, dims[0], dims[1])
    for (w, b) in params["fc2"]:
        s = jax.nn.sigmoid(h)
        h = jnp.einsum("ndm,dmo->ndo", s, w) + b[None]
    return h[:, :, 0]


if __name__ == "__main__":
    dims = [4, 16, 1]          # d=4 nodes, m1=16 hidden units, output width 1
    n = 64                     # batch size
    key = jax.random.PRNGKey(0)
    k_x, k_p = jax.random.split(key)
    x = jax.random.normal(k_x, (n, dims[0]), jnp.float32)
    params = init_params(k_p, dims)

    fwd = jax.jit(functools.partial(notears_mlp_forward, dims=dims))
    out = jax.block_until_ready(fwd(x, params))

    ref = reference_forward(x, params, dims)
    assert out.shape == (n, dims[0])
    assert jnp.allclose(out, ref, atol=1e-5, rtol=1e-5), "mismatch vs reference"
    print("KERNEL_OK")
</pallas_src>

<mosaic_0001>
module attributes {stable_mosaic.version = 11 : i64} {
  func.func @kernel(%arg0: i32, %arg1: memref<64x4xf32, #tpu.memory_space<vmem>>, %arg2: memref<4x64xf32, #tpu.memory_space<vmem>>, %arg3: memref<1x64xf32, #tpu.memory_space<vmem>>, %arg4: memref<64x4xf32, #tpu.memory_space<vmem>>, %arg5: memref<1x4xf32, #tpu.memory_space<vmem>>, %arg6: memref<64x4xf32, #tpu.memory_space<vmem>>) attributes {dimension_semantics = [#tpu.dimension_semantics<parallel>], iteration_bounds = array<i64: 1>, scalar_prefetch = 0 : i64, scratch_operands = 0 : i64, tpu.core_type = #tpu.core_type<tc>, window_params = [{transform_indices = @transform_0, window_bounds = array<i64: 64, 4>}, {pipeline_mode = #tpu.pipeline_mode<synchronous>, transform_indices = @transform_1, window_bounds = array<i64: 4, 64>}, {pipeline_mode = #tpu.pipeline_mode<synchronous>, transform_indices = @transform_2, window_bounds = array<i64: 1, 64>}, {pipeline_mode = #tpu.pipeline_mode<synchronous>, transform_indices = @transform_3, window_bounds = array<i64: 64, 4>}, {pipeline_mode = #tpu.pipeline_mode<synchronous>, transform_indices = @transform_4, window_bounds = array<i64: 1, 4>}, {transform_indices = @transform_5, window_bounds = array<i64: 64, 4>}]} {
    %c0 = arith.constant 0 : index
    %c0_0 = arith.constant 0 : index
    %0 = vector.load %arg1[%c0, %c0_0] : memref<64x4xf32, #tpu.memory_space<vmem>>, vector<64x4xf32>
    %c0_1 = arith.constant 0 : index
    %c0_2 = arith.constant 0 : index
    %1 = vector.load %arg2[%c0_1, %c0_2] : memref<4x64xf32, #tpu.memory_space<vmem>>, vector<4x64xf32>
    %cst = arith.constant dense<0.000000e+00> : vector<64x64xf32>
    %2 = tpu.matmul %0, %1, %cst {dimension_numbers = #tpu.dot_dimension_numbers<[1], [0], [0], [1], [0, 0, 1, 1], [], []>} : vector<64x4xf32>, vector<4x64xf32>, vector<64x64xf32> -> vector<64x64xf32>
    %c0_3 = arith.constant 0 : index
    %c0_4 = arith.constant 0 : index
    %3 = vector.load %arg3[%c0_3, %c0_4] : memref<1x64xf32, #tpu.memory_space<vmem>>, vector<1x64xf32>
    %4 = vector.broadcast %3 : vector<1x64xf32> to vector<64x64xf32>
    %5 = arith.addf %2, %4 : vector<64x64xf32>
    %6 = arith.negf %5 : vector<64x64xf32>
    %7 = math.exp %6 : vector<64x64xf32>
    %cst_5 = arith.constant 1.000000e+00 : f32
    %8 = vector.broadcast %cst_5 : f32 to vector<64x64xf32>
    %9 = arith.addf %8, %7 : vector<64x64xf32>
    %10 = arith.divf %8, %9 : vector<64x64xf32>
    %c0_6 = arith.constant 0 : index
    %c0_7 = arith.constant 0 : index
    %11 = vector.load %arg4[%c0_6, %c0_7] : memref<64x4xf32, #tpu.memory_space<vmem>>, vector<64x4xf32>
    %cst_8 = arith.constant dense<0.000000e+00> : vector<64x4xf32>
    %12 = tpu.matmul %10, %11, %cst_8 {dimension_numbers = #tpu.dot_dimension_numbers<[1], [0], [0], [1], [0, 0, 1, 1], [], []>} : vector<64x64xf32>, vector<64x4xf32>, vector<64x4xf32> -> vector<64x4xf32>
    %c0_9 = arith.constant 0 : index
    %c0_10 = arith.constant 0 : index
    %13 = vector.load %arg5[%c0_9, %c0_10] : memref<1x4xf32, #tpu.memory_space<vmem>>, vector<1x4xf32>
    %14 = vector.broadcast %13 : vector<1x4xf32> to vector<64x4xf32>
    %15 = arith.addf %12, %14 : vector<64x4xf32>
    %c0_11 = arith.constant 0 : index
    %c0_12 = arith.constant 0 : index
    %16 = vector.load %arg6[%c0_11, %c0_12] : memref<64x4xf32, #tpu.memory_space<vmem>>, vector<64x4xf32>
    tpu.vector_store %arg6[%c0_11, %c0_12], %15 {strides = array<i32>} : memref<64x4xf32, #tpu.memory_space<vmem>>, vector<64x4xf32>,
    return
  }
  func.func @transform_0(%arg0: i32) -> (i32, i32) {
    %c0_i32 = arith.constant 0 : i32
    %c0_i32_0 = arith.constant 0 : i32
    return %arg0, %c0_i32 : i32, i32
  }
  func.func @transform_1(%arg0: i32) -> (i32, i32) {
    %c0_i32 = arith.constant 0 : i32
    %c0_i32_0 = arith.constant 0 : i32
    %c0_i32_1 = arith.constant 0 : i32
    return %c0_i32, %c0_i32_0 : i32, i32
  }
  func.func @transform_2(%arg0: i32) -> (i32, i32) {
    %c0_i32 = arith.constant 0 : i32
    %c0_i32_0 = arith.constant 0 : i32
    %c0_i32_1 = arith.constant 0 : i32
    return %c0_i32, %c0_i32_0 : i32, i32
  }
  func.func @transform_3(%arg0: i32) -> (i32, i32) {
    %c0_i32 = arith.constant 0 : i32
    %c0_i32_0 = arith.constant 0 : i32
    %c0_i32_1 = arith.constant 0 : i32
    return %c0_i32, %c0_i32_0 : i32, i32
  }
  func.func @transform_4(%arg0: i32) -> (i32, i32) {
    %c0_i32 = arith.constant 0 : i32
    %c0_i32_0 = arith.constant 0 : i32
    %c0_i32_1 = arith.constant 0 : i32
    return %c0_i32, %c0_i32_0 : i32, i32
  }
  func.func @transform_5(%arg0: i32) -> (i32, i32) {
    %c0_i32 = arith.constant 0 : i32
    %c0_i32_0 = arith.constant 0 : i32
    return %arg0, %c0_i32 : i32, i32
  }
}

</mosaic_0001>

<bundles_post_ra>
// kernel: notears_mlp_forward.1
= control target key start
LH: loop header
LB: loop body
LE: loop exit
PB: predicated region body
PF: predicated region fallthrough
CT: control target
= control target key end

     0   :  { %vm61_vm0 = vcmask 1043456   ;;  %vm36_vm1 = vcmask 31744   ;;  %vm233_vm2 = vcmask 523264   ;;  %s660_s1 = inlined_call_operand.vmem [shape: f32[4,64], index: 1, kind: input, shape index: {}]   ;;  %s661_s0 = inlined_call_operand.vmem [shape: f32[64,4], index: 0, kind: input, shape index: {}]   ;;  %s662_s3 = inlined_call_operand.vmem [shape: f32[64,4], index: 3, kind: input, shape index: {}]   ;;  %s663_s2 = inlined_call_operand.vmem [shape: f32[1,64], index: 2, kind: input, shape index: {}]   ;;  %s664_s4 = inlined_call_operand.vmem [shape: f32[1,4], index: 4, kind: input, shape index: {}]   ;;  %s665_s5 = inlined_call_operand.vmem [shape: f32[64,4], index: 5, kind: output, shape index: {}]  }
   0x1   :  { %v28_v0 = vld [vmem:[%s660_s1] sm:$0xf]  ;;  %v21_v2 = vld [vmem:[%s661_s0 + $0x8] sm:$0xff]  ;;  %v22_v3 = vld [vmem:[%s661_s0 + $0x10] sm:$0xff] }
   0x2   :  { %v20_v1 = vld [vmem:[%s661_s0] sm:$0xff]  ;;  %427 = vmatprep.subr.msk.mxu0 %vm61_vm0, %v28_v0  ;;  %v23_v4 = vld [vmem:[%s661_s0 + $0x18] sm:$0xff]  ;;  %v25_v6 = vld [vmem:[%s661_s0 + $0x28] sm:$0xff] }
   0x3   :  { %429 = vmatprep.mubr.msk.f32.mxu0 %vm36_vm1, %v20_v1  ;;  %428 = vmatpush3.msk.msra.mxu0 %vm61_vm0, %v28_v0  ;;  %v24_v5 = vld [vmem:[%s661_s0 + $0x20] sm:$0xff]  ;;  %v26_v7 = vld [vmem:[%s661_s0 + $0x30] sm:$0xff]  ;;  %v27_v8 = vld [vmem:[%s661_s0 + $0x38] sm:$0xff] }
   0x4   :  { %430 = vmatmul.mubr.msk.f32.vlgmr.msra.gmra.mrb[0].mxu0 %vm36_vm1, %v21_v2  ;;  %v218_v9 = vld [vmem:[%s662_s3] sm:$0xff]  ;;  %v219_v10 = vld [vmem:[%s662_s3 + $0x8] sm:$0xff]  ;;  %v220_v12 = vld [vmem:[%s662_s3 + $0x10] sm:$0xff] }
   0x5   :  { %432 = vmatprep.mubr.msk.f32.mxu0 %vm36_vm1, %v22_v3  ;;  %v469_v11 = vpack.c.bf16 %v219_v10, %v218_v9  ;;  %v221_v13 = vld [vmem:[%s662_s3 + $0x18] sm:$0xff]  ;;  %v222_v15 = vld [vmem:[%s662_s3 + $0x20] sm:$0xff]  ;;  %v223_v16 = vld [vmem:[%s662_s3 + $0x28] sm:$0xff] }
   0x6   :  { %v473_v14 = vpack.c.bf16 %v221_v13, %v220_v12  ;;  %v477_v17 = vpack.c.bf16 %v223_v16, %v222_v15  ;;  %v224_v18 = vld [vmem:[%s662_s3 + $0x30] sm:$0xff]  ;;  %v225_v19 = vld [vmem:[%s662_s3 + $0x38] sm:$0xff]  ;;  %v375_v21 = vld [vmem:[%s663_s2] ss:$0 sm:$0xff] }
   0x7   :  { %470 = vmatprep.subr.bf16.mxu0 %v469_v11  ;;  %485 = vmatprep.subr.bf16.mxu1 %v469_v11  ;;  %v481_v20 = vpack.c.bf16 %v225_v19, %v224_v18 }
   0x8   :  { %433 = vmatmul.mubr.msk.f32.gmra.mrb[2].mxu0 %vm36_vm1, %v23_v4  ;;  %489 = vmatpush3.bf16.msra.mxu1 %v469_v11 }
   0x9   :  { %435 = vmatprep.mubr.msk.f32.mxu0 %vm36_vm1, %v24_v5  ;;  %472 = vmatpush3.bf16.msra.mxu0 %v469_v11 }
   0xa   :  { %474 = vmatprep.subr.bf16.mxu0 %v473_v14  ;;  %486 = vmatprep.subr.bf16.mxu1 %v473_v14 }
   0xc   :  { %436 = vmatmul.mubr.msk.f32.gmra.mrb[4].mxu0 %vm36_vm1, %v25_v6  ;;  %490 = vmatpush3.bf16.msra.mxu1 %v473_v14  ;;  %v393_v6 = vld [vmem:[%s664_s4] ss:$0 sm:$0xff] }
   0xd   :  { %438 = vmatprep.mubr.msk.f32.mxu0 %vm36_vm1, %v26_v7  ;;  %476 = vmatpush3.bf16.msra.mxu0 %v473_v14 }
   0xe   :  { %478 = vmatprep.subr.bf16.mxu0 %v477_v17  ;;  %487 = vmatprep.subr.bf16.mxu1 %v477_v17 }
  0x10   :  { %439 = vmatmul.mubr.msk.f32.gmra.mrb[6].mxu0 %vm36_vm1, %v27_v8  ;;  %491 = vmatpush3.bf16.msra.mxu1 %v477_v17 }
  0x11   :  { %480 = vmatpush3.bf16.msra.mxu0 %v477_v17  ;;  %488 = vmatprep.subr.bf16.mxu1 %v481_v20 }
  0x12   :  { %482 = vmatprep.subr.bf16.mxu0 %v481_v20 }
  0x14   :  { %492 = vmatpush3.bf16.msra.mxu1 %v481_v20 }
  0x15   :  { %484 = vmatpush3.bf16.msra.mxu0 %v481_v20 }
  0xd7   :  { %v431_v22 = vpop.f32.mrb[0].mxu0 }
  0xd8   :  { %v137_v23 = vadd.f32 %v431_v22, %v375_v21  ;;  %v131_v24 = vpop.f32.mrb[1].mxu0 }
  0xd9   :  { %v132_v25 = vadd.f32 %v375_v21, %v131_v24 }
  0xda   :  { %v386_v26 = vmul.f32 -1.442695, %v137_v23 }
  0xdb   :  { %v385_v27 = vmul.f32 -1.442695, %v132_v25  ;;  %v434_v28 = vpop.f32.mrb[2].mxu0 }
  0xdc   :  { %493 = vpow2.f32 %v386_v26  ;;  %v147_v29 = vadd.f32 %v434_v28, %v375_v21  ;;  %v141_v30 = vpop.f32.mrb[3].mxu0 }
  0xdd   :  { %495 = vpow2.f32 %v385_v27  ;;  %v142_v31 = vadd.f32 %v375_v21, %v141_v30 }
  0xde   :  { %v388_v32 = vmul.f32 -1.442695, %v147_v29 }
  0xdf   :  { %v387_v33 = vmul.f32 -1.442695, %v142_v31  ;;  %v437_v34 = vpop.f32.mrb[4].mxu0 }
  0xe0   :  { %497 = vpow2.f32 %v388_v32  ;;  %v157_v35 = vadd.f32 %v437_v34, %v375_v21  ;;  %v151_v36 = vpop.f32.mrb[5].mxu0 }
  0xe1   :  { %499 = vpow2.f32 %v387_v33  ;;  %v152_v37 = vadd.f32 %v375_v21, %v151_v36 }
  0xe2   :  { %v390_v38 = vmul.f32 -1.442695, %v157_v35 }
  0xe3   :  { %v389_v39 = vmul.f32 -1.442695, %v152_v37  ;;  %v440_v40 = vpop.f32.mrb[6].mxu0 }
  0xe4   :  { %501 = vpow2.f32 %v390_v38  ;;  %v167_v41 = vadd.f32 %v440_v40, %v375_v21  ;;  %v161_v42 = vpop.f32.mrb[7].mxu0 }
  0xe5   :  { %503 = vpow2.f32 %v389_v39  ;;  %v162_v43 = vadd.f32 %v375_v21, %v161_v42 }
  0xe6   :  { %v494_v44 = vpop.eup %493  ;;  %v392_v45 = vmul.f32 -1.442695, %v167_v41 }
  0xe7   :  { %v496_v46 = vpop.eup %495  ;;  %v195_v47 = vadd.f32 1.0, %v494_v44  ;;  %v391_v48 = vmul.f32 -1.442695, %v162_v43 }
  0xe8   :  { %v194_v49 = vadd.f32 1.0, %v496_v46  ;;  %505 = vpow2.f32 %v392_v45 }
  0xe9   :  { %507 = vrcp.f32 %v195_v47 }
  0xea   :  { %v498_v50 = vpop.eup %497  ;;  %509 = vrcp.f32 %v194_v49 }
  0xeb   :  { %v500_v51 = vpop.eup %499  ;;  %v197_v52 = vadd.f32 1.0, %v498_v50  ;;  %511 = vpow2.f32 %v391_v48 }
  0xec   :  { %v196_v53 = vadd.f32 1.0, %v500_v51 }
  0xee   :  { %v502_v54 = vpop.eup %501  ;;  %513 = vrcp.f32 %v196_v53 }
  0xef   :  { %v504_v55 = vpop.eup %503  ;;  %515 = vrcp.f32 %v197_v52  ;;  %v199_v56 = vadd.f32 1.0, %v502_v54 }
  0xf0   :  { %v198_v57 = vadd.f32 1.0, %v504_v55 }
  0xf2   :  { %v506_v58 = vpop.eup %505  ;;  %517 = vrcp.f32 %v198_v57 }
  0xf3   :  { %v508_v59 = vpop.eup %507  ;;  %519 = vrcp.f32 %v199_v56  ;;  %v201_v62 = vadd.f32 1.0, %v506_v58 }
  0xf4   :  { %v510_v60 = vpop.eup %509 }
  0xf5   :  { %v512_v61 = vpop.eup %511  ;;  %457 = vmatprep.mubr.msk.f32.mxu0 %vm233_vm2, %v510_v60 }
  0xf6   :  { %v200_v63 = vadd.f32 1.0, %v512_v61  ;;  %458 = vmatmul.mubr.msk.f32.vlgmr.msra.gmra.mrb[8].mxu0 %vm233_vm2, %v508_v59 }
  0xf8   :  { %v514_v0 = vpop.eup %513  ;;  %521 = vrcp.f32 %v200_v63 }
  0xf9   :  { %v516_v1 = vpop.eup %515  ;;  %523 = vrcp.f32 %v201_v62  ;;  %460 = vmatprep.mubr.msk.f32.mxu1 %vm233_vm2, %v514_v0 }
  0xfa   :  { %461 = vmatmul.mubr.msk.f32.vlgmr.msra.gmra.mrb[0].mxu1 %vm233_vm2, %v516_v1 }
  0xfc   :  { %v518_v2 = vpop.eup %517 }
  0xfd   :  { %v520_v3 = vpop.eup %519  ;;  %463 = vmatprep.mubr.msk.f32.mxu1 %vm233_vm2, %v518_v2 }
  0xfe   :  { %464 = vmatmul.mubr.msk.f32.gmra.mrb[2].mxu1 %vm233_vm2, %v520_v3 }
 0x102   :  { %v522_v4 = vpop.eup %521 }
 0x103   :  { %v524_v5 = vpop.eup %523  ;;  %466 = vmatprep.mubr.msk.f32.mxu1 %vm233_vm2, %v522_v4 }
 0x104   :  { %467 = vmatmul.mubr.msk.f32.gmra.mrb[4].mxu1 %vm233_vm2, %v524_v5 }
 0x1c9   :  { %v459_v7 = vpop.f32.mrb[8].mxu0 }
 0x1ca   :  { %v330_v8 = vadd.f32 %v459_v7, %v393_v6  ;;  %v324_v9 = vpop.f32.mrb[9].mxu0 }
 0x1cb   :  { %v325_v10 = vadd.f32 %v393_v6, %v324_v9 }
 0x1cc   :  { %364 = vst.msk [vmem:[%s665_s5 + $0x8] sm:$0xff] %vm36_vm1, %v330_v8 }
 0x1cd   :  { %363 = vst.msk [vmem:[%s665_s5] sm:$0xff] %vm36_vm1, %v325_v10  ;;  %v462_v11 = vpop.f32.mrb[0].mxu1 }
 0x1ce   :  { %v340_v12 = vadd.f32 %v462_v11, %v393_v6  ;;  %v334_v13 = vpop.f32.mrb[1].mxu1 }
 0x1cf   :  { %v335_v14 = vadd.f32 %v393_v6, %v334_v13 }
 0x1d0   :  { %366 = vst.msk [vmem:[%s665_s5 + $0x18] sm:$0xff] %vm36_vm1, %v340_v12 }
 0x1d1   :  { %365 = vst.msk [vmem:[%s665_s5 + $0x10] sm:$0xff] %vm36_vm1, %v335_v14  ;;  %v465_v15 = vpop.f32.mrb[2].mxu1 }
 0x1d2   :  { %v350_v16 = vadd.f32 %v465_v15, %v393_v6  ;;  %v344_v17 = vpop.f32.mrb[3].mxu1 }
 0x1d3   :  { %v345_v18 = vadd.f32 %v393_v6, %v344_v17 }
 0x1d4   :  { %368 = vst.msk [vmem:[%s665_s5 + $0x28] sm:$0xff] %vm36_vm1, %v350_v16 }
 0x1d5   :  { %367 = vst.msk [vmem:[%s665_s5 + $0x20] sm:$0xff] %vm36_vm1, %v345_v18 }
 0x1d7   :  { %v468_v19 = vpop.f32.mrb[4].mxu1 }
 0x1d8   :  { %v360_v20 = vadd.f32 %v468_v19, %v393_v6  ;;  %v354_v21 = vpop.f32.mrb[5].mxu1 }
 0x1d9   :  { %v355_v22 = vadd.f32 %v393_v6, %v354_v21 }
 0x1da   :  { %370 = vst.msk [vmem:[%s665_s5 + $0x38] sm:$0xff] %vm36_vm1, %v360_v20 }
 0x1db   :  { %369 = vst.msk [vmem:[%s665_s5 + $0x30] sm:$0xff] %vm36_vm1, %v355_v22 }

</bundles_post_ra>
